<compile_context>
chip_gen: v5e
topology: v5e:2x2
jax: 0.10.0
libtpu: 0.0.40
codegen_flags: <defaults>
</compile_context>

<pallas_src>
import jax
import jax.numpy as jnp
from jax.experimental import pallas as pl
from jax.experimental.pallas import tpu as pltpu


def _round_up(n, m):
    return -(-n // m) * m


def _affine_kernel(x_ref, w_ref, b_ref, o_ref):
    # y = x @ W_eff + b_eff  (f32 accumulation; x cast to the MXU dtype here,
    # which is a no-op for the f32 path and a free VPU cast for bf16).
    x = x_ref[...].astype(w_ref.dtype)
    acc = jnp.dot(x, w_ref[...], preferred_element_type=jnp.float32)  # (TB, CP)
    nc = o_ref.shape[-1]
    o_ref[...] = acc[:, :nc] + b_ref[...]


def prepare_params(params, mxu_dtype=jnp.bfloat16):
    """Collapse the 3-layer linear stack; pad only the n_classes (lane) dim.

    Returns:
      w_pad: (features, CP) in mxu_dtype, CP = round_up(n_classes, 128),
             padded columns are exact zeros.
      b:     (1, n_classes) float32 (bias add stays f32).
    """
    w1, b1 = params["w1"], params["b1"]
    w2, b2 = params["w2"], params["b2"]
    w3, b3 = params["w3"], params["b3"]

    # Algebraic collapse (exact in f32: no activation in the reference module).
    w_eff = w1 @ w2 @ w3                      # (features, n_classes)
    b_eff = (b1 @ w2 + b2) @ w3 + b3          # (n_classes,)

    features, n_classes = w_eff.shape
    CP = _round_up(n_classes, 128)

    w_pad = jnp.pad(w_eff, ((0, 0), (0, CP - n_classes))).astype(mxu_dtype)
    b = b_eff.reshape(1, n_classes).astype(jnp.float32)
    return w_pad, b


@jax.jit
def anova_dnn_forward(x, w_pad, b):
    """x: (B, C, H, W) float32.  w_pad/b: from prepare_params."""
    B = x.shape[0]
    feats = x.shape[1] * x.shape[2] * x.shape[3]
    CP = w_pad.shape[1]
    n_classes = b.shape[1]

    # Flatten like torch's x.view(batches, -1); no padding of batch or K dim.
    x2d = x.reshape(B, feats)

    # Batch tiling: one step for B <= 512, otherwise 512-row tiles with a
    # ragged (masked) last block.  TB == B or TB % 8 == 0, so blocks are legal.
    TB = B if B <= 512 else 512
    n_steps = pl.cdiv(B, TB)

    itemsize = jnp.dtype(w_pad.dtype).itemsize
    cost = pl.CostEstimate(
        flops=2 * B * feats * CP,
        bytes_accessed=(B * feats * 4            # x (f32 in, cast in-kernel)
                        + feats * CP * itemsize  # collapsed weight
                        + n_classes * 4          # bias
                        + B * n_classes * 4),    # output
        transcendentals=0,
    )

    out = pl.pallas_call(
        _affine_kernel,
        out_shape=jax.ShapeDtypeStruct((B, n_classes), jnp.float32),
        grid=(n_steps,),
        in_specs=[
            pl.BlockSpec((TB, feats), lambda i: (i, 0)),      # x tile, streamed
            pl.BlockSpec((feats, CP), lambda i: (0, 0)),      # weight, VMEM-resident
            pl.BlockSpec((1, n_classes), lambda i: (0, 0)),   # bias, VMEM-resident
        ],
        out_specs=pl.BlockSpec((TB, n_classes), lambda i: (i, 0)),
        compiler_params=pltpu.CompilerParams(
            dimension_semantics=("parallel",),
        ),
        cost_estimate=cost,
    )(x2d, w_pad, b)

    return out


def init_params(key, features=16, hidden=76, n_classes=2):
    """Deterministic init mimicking nn.Linear's uniform(-1/sqrt(fan_in), 1/sqrt(fan_in)).

    Weights stored as (in_features, out_features) so y = x @ W + b, which is
    mathematically identical to torch's x @ W.T + b layout.
    """
    ks = jax.random.split(key, 6)

    def lin(kw, kb, fan_in, fan_out):
        bound = 1.0 / jnp.sqrt(jnp.float32(fan_in))
        w = jax.random.uniform(kw, (fan_in, fan_out), jnp.float32, -bound, bound)
        b = jax.random.uniform(kb, (fan_out,), jnp.float32, -bound, bound)
        return w, b

    w1, b1 = lin(ks[0], ks[1], features, hidden)
    w2, b2 = lin(ks[2], ks[3], hidden, hidden)
    w3, b3 = lin(ks[4], ks[5], hidden, n_classes)
    return {"w1": w1, "b1": b1, "w2": w2, "b2": b2, "w3": w3, "b3": b3}


def _reference(x, params):
    """Plain-JAX reference: the original (un-collapsed) 3-layer forward."""
    B = x.shape[0]
    x2d = x.reshape(B, -1)
    h = x2d @ params["w1"] + params["b1"]
    h = h @ params["w2"] + params["b2"]
    return h @ params["w3"] + params["b3"]


if __name__ == "__main__":
    key = jax.random.PRNGKey(0)
    k_x, k_x2, k_p = jax.random.split(key, 3)

    # features = channel * H * W = 1 * 4 * 4 = 16, matching the module defaults.
    batch, channel, H, W = 2, 1, 4, 4
    n_classes = 2

    params = init_params(k_p, features=channel * H * W, hidden=76, n_classes=n_classes)

    # Small-batch check (single grid step).
    x = jax.random.normal(k_x, (batch, channel, H, W), jnp.float32)
    ref = _reference(x, params)

    # Exact f32 MXU path: tight tolerance.
    w_f32, b_f32 = prepare_params(params, mxu_dtype=jnp.float32)
    out_f32 = jax.block_until_ready(anova_dnn_forward(x, w_f32, b_f32))
    assert out_f32.shape == (batch, n_classes), out_f32.shape
    assert jnp.allclose(out_f32, ref, atol=1e-4, rtol=1e-4), (out_f32, ref)

    # Default bf16 MXU path (f32 accumulation): loosened tolerance vs f32 ref.
    w_bf16, b_bf16 = prepare_params(params)
    out_bf16 = jax.block_until_ready(anova_dnn_forward(x, w_bf16, b_bf16))
    assert out_bf16.shape == (batch, n_classes), out_bf16.shape
    assert jnp.allclose(out_bf16, ref, atol=2e-2, rtol=2e-2), (out_bf16, ref)

    # Larger batch: multiple grid steps + ragged (masked) last block.
    big_batch = 520
    x_big = jax.random.normal(k_x2, (big_batch, channel, H, W), jnp.float32)
    ref_big = _reference(x_big, params)

    out_big_f32 = jax.block_until_ready(anova_dnn_forward(x_big, w_f32, b_f32))
    assert out_big_f32.shape == (big_batch, n_classes), out_big_f32.shape
    assert jnp.allclose(out_big_f32, ref_big, atol=1e-4, rtol=1e-4)

    out_big_bf16 = jax.block_until_ready(anova_dnn_forward(x_big, w_bf16, b_bf16))
    assert jnp.allclose(out_big_bf16, ref_big, atol=2e-2, rtol=2e-2)

    print("KERNEL_OK")
</pallas_src>

<mosaic_0001>
module attributes {stable_mosaic.version = 11 : i64} {
  func.func @_affine_kernel(%arg0: i32, %arg1: memref<2x16xf32, #tpu.memory_space<vmem>>, %arg2: memref<16x128xf32, #tpu.memory_space<vmem>>, %arg3: memref<1x2xf32, #tpu.memory_space<vmem>>, %arg4: memref<2x2xf32, #tpu.memory_space<vmem>>) attributes {dimension_semantics = [#tpu.dimension_semantics<parallel>], iteration_bounds = array<i64: 1>, scalar_prefetch = 0 : i64, scratch_operands = 0 : i64, tpu.core_type = #tpu.core_type<tc>, window_params = [{transform_indices = @transform_0, window_bounds = array<i64: 2, 16>}, {pipeline_mode = #tpu.pipeline_mode<synchronous>, transform_indices = @transform_1, window_bounds = array<i64: 16, 128>}, {pipeline_mode = #tpu.pipeline_mode<synchronous>, transform_indices = @transform_2, window_bounds = array<i64: 1, 2>}, {transform_indices = @transform_3, window_bounds = array<i64: 2, 2>}]} {
    %c0 = arith.constant 0 : index
    %c0_0 = arith.constant 0 : index
    %0 = vector.load %arg1[%c0, %c0_0] : memref<2x16xf32, #tpu.memory_space<vmem>>, vector<2x16xf32>
    %c0_1 = arith.constant 0 : index
    %c0_2 = arith.constant 0 : index
    %1 = vector.load %arg2[%c0_1, %c0_2] : memref<16x128xf32, #tpu.memory_space<vmem>>, vector<16x128xf32>
    %cst = arith.constant dense<0.000000e+00> : vector<2x128xf32>
    %2 = tpu.matmul %0, %1, %cst {dimension_numbers = #tpu.dot_dimension_numbers<[1], [0], [0], [1], [0, 0, 1, 1], [], []>} : vector<2x16xf32>, vector<16x128xf32>, vector<2x128xf32> -> vector<2x128xf32>
    %3 = vector.extract_strided_slice %2 {offsets = [0, 0], sizes = [2, 2], strides = [1, 1]} : vector<2x128xf32> to vector<2x2xf32>
    %c0_3 = arith.constant 0 : index
    %c0_4 = arith.constant 0 : index
    %4 = vector.load %arg3[%c0_3, %c0_4] : memref<1x2xf32, #tpu.memory_space<vmem>>, vector<1x2xf32>
    %5 = vector.broadcast %4 : vector<1x2xf32> to vector<2x2xf32>
    %6 = arith.addf %3, %5 : vector<2x2xf32>
    %c0_5 = arith.constant 0 : index
    %c0_6 = arith.constant 0 : index
    %7 = vector.load %arg4[%c0_5, %c0_6] : memref<2x2xf32, #tpu.memory_space<vmem>>, vector<2x2xf32>
    tpu.vector_store %arg4[%c0_5, %c0_6], %6 {strides = array<i32>} : memref<2x2xf32, #tpu.memory_space<vmem>>, vector<2x2xf32>,
    return
  }
  func.func @transform_0(%arg0: i32) -> (i32, i32) {
    %c0_i32 = arith.constant 0 : i32
    %c0_i32_0 = arith.constant 0 : i32
    return %arg0, %c0_i32 : i32, i32
  }
  func.func @transform_1(%arg0: i32) -> (i32, i32) {
    %c0_i32 = arith.constant 0 : i32
    %c0_i32_0 = arith.constant 0 : i32
    %c0_i32_1 = arith.constant 0 : i32
    return %c0_i32, %c0_i32_0 : i32, i32
  }
  func.func @transform_2(%arg0: i32) -> (i32, i32) {
    %c0_i32 = arith.constant 0 : i32
    %c0_i32_0 = arith.constant 0 : i32
    %c0_i32_1 = arith.constant 0 : i32
    return %c0_i32, %c0_i32_0 : i32, i32
  }
  func.func @transform_3(%arg0: i32) -> (i32, i32) {
    %c0_i32 = arith.constant 0 : i32
    %c0_i32_0 = arith.constant 0 : i32
    return %arg0, %c0_i32 : i32, i32
  }
}

</mosaic_0001>

<bundles_post_ra>
// kernel: anova_dnn_forward.1
= control target key start
LH: loop header
LB: loop body
LE: loop exit
PB: predicated region body
PF: predicated region fallthrough
CT: control target
= control target key end

     0   :  { %8 = vsyncpa [#allocation3], 0  ;;  %s176_s0 = inlined_call_operand.vmem [shape: f32[2,16], index: 0, kind: input, shape index: {}]   ;;  %s177_s1 = inlined_call_operand.hbm [shape: f32[16,128], index: 1, kind: input, shape index: {}]   ;;  %s178_s2 = inlined_call_operand.vmem [shape: f32[1,2], index: 2, kind: input, shape index: {}]   ;;  %s179_s3 = inlined_call_operand.hbm [shape: f32[2,2], index: 3, kind: output, shape index: {}]  }
   0x1   :  { %9 = vsyncpa [#allocation4], 0  ;;  %s16_s14 = sshll.u32 %s177_s1, 4  ;;  %s140_s15 = smov [#allocation2]   ;;  %s17_s14 = int_to_ptr.hbm [resolvable:$true] %s16_s14 }
   0x2   :  { %s18_s16 = sshll.u32 %s140_s15, 4  ;;  %s141_s17 = smov 128   ;;  %s19_s16 = int_to_ptr.vmem [resolvable:$true] %s18_s16 }
   0x3   :  { %s142_s18 = smov 8  }
   0x4   :  { %24 = dma.hbm_to_vmem [thread:$0]  %s17_s14, 256, %s19_s16, [#allocation3], %s141_s17, %s141_s17, %s142_s18  }
   0x5   :  { %136 = dma.done.wait [#allocation3], 256  }
   0x6   :  { %137 = vsyncadd [#allocation3], 4294967040  ;;  %v33_v0 = vld [vmem:[#allocation2 + $0x8] sm:$0xff]  ;;  %v32_v1 = vld [vmem:[#allocation2] sm:$0xff]  ;;  %vm34_vm0 = vcmask 130048   ;;  %s143_s22 = smov [#allocation5]  }
   0x7   :  { %52 = vmatpush.msra.mxu0 %v33_v0  ;;  %v31_v2 = vld [vmem:[%s176_s0] sm:$0x3]  ;;  %s70_s23 = sshll.u32 %s143_s22, 4  ;;  %s72_s26 = sshll.u32 %s179_s3, 4  ;;  %vm63_vm1 = vcmask 9216   ;;  %s71_s23 = int_to_ptr.vmem [resolvable:$true] %s70_s23  ;;  %s73_s26 = int_to_ptr.hbm [resolvable:$true] %s72_s26 }
   0x8   :  { %v87_v3 = vld [vmem:[%s178_s2] ss:$0 sm:$0xff] }
   0x9   :  { %53 = vmatpush.msra.mxu0 %v32_v1 }
   0xa   :  { %82 = vmatmul.msk.f32.vlgmr.msra.gmra.mxu0 %vm34_vm0, %v31_v2 }
  0x87   :  { %v55_v4 = vpop.f32.mrf.mxu0 }
  0x88   :  { %v62_v5 = vadd.f32 %v87_v3, %v55_v4 }
  0x8a   :  { %64 = vst.msk [vmem:[#allocation5] sm:$0x3] %vm63_vm1, %v62_v5 }
  0x8b   :  { %75 = dma.vmem_to_hbm [thread:$0]  %s71_s23, 32, %s73_s26, [#allocation4]  }
  0x8c   :  { %138 = dma.done.wait [#allocation4], 32  }
  0x8d   :  { %139 = vsyncadd [#allocation4], 4294967264 }
  0x8e   :  { %80 = vsyncpa [#allocation3], 1 }
  0x8f   :  { %81 = vsyncpa [#allocation4], 1 }

</bundles_post_ra>
